<compile_context>
chip_gen: v7x
topology: tpu7x:2x2x1
jax: 0.10.0
libtpu: 0.0.40
codegen_flags: <defaults>
</compile_context>

<pallas_src>
import jax
import jax.numpy as jnp
from jax import lax
from jax.experimental import pallas as pl
from jax.experimental.pallas import tpu as pltpu


def _poly_attention_kernel(emb_ref, mb_ref, wt_ref, cct_ref, out_ref):
    # emb_ref:  (TB, L, D)   embeddings tile (TB batch elements per grid step)
    # mb_ref:   (TB*L, 2)    col 0 = bias.mean(dim=2), col 1 = mask (1.0 keep / 0.0 drop)
    # wt_ref:   (D, P)       linear weight pre-transposed (x @ W.T == x @ wt)
    # cct_ref:  (P, K)       context codes pre-transposed
    # out_ref:  (TB, K*D)    lane-dense poly representation
    TB, L, D = emb_ref.shape
    _, K = cct_ref.shape
    hp = lax.Precision.HIGHEST

    emb = emb_ref[...].astype(jnp.float32)                          # (TB, L, D)
    wt = wt_ref[...].astype(jnp.float32)                            # (D, P)
    cct = cct_ref[...].astype(jnp.float32)                          # (P, K)

    # Projection + scores as ONE big MXU matmul over all TB*L history rows.
    # (L == 8 makes the (TB, L, D) -> (TB*L, D) merge a free sublane relayout.)
    emb2d = emb.reshape(TB * L, D)
    proj = jnp.tanh(jnp.dot(emb2d, wt,
                            preferred_element_type=jnp.float32, precision=hp))   # (TB*L, P)
    scores = jnp.dot(proj, cct,
                     preferred_element_type=jnp.float32, precision=hp)           # (TB*L, K)

    mb = mb_ref[...].astype(jnp.float32)                            # (TB*L, 2)
    scores = scores + mb[:, 0:1]                                    # + bias mean (bcast over K)
    # masked_fill_(~attn_mask, 1e-30)  (1e-30, NOT -inf, exactly as in the reference)
    scores = jnp.where(mb[:, 1:2] > 0.5, scores, jnp.float32(1e-30))

    # Softmax over the history dimension L (per batch element, per context code).
    s3 = scores.reshape(TB, L, K)
    m = jnp.max(s3, axis=1, keepdims=True)                          # (TB, 1, K)
    e = jnp.exp(s3 - m)
    denom = jnp.sum(e, axis=1, keepdims=True)                       # (TB, 1, K)
    weights = e / denom                                             # exact divide (tolerance-critical)

    # poly_repr[b, k, :] = sum_l weights[b, l, k] * emb[b, l, :]
    # Unrolled over K on the VPU/XLU (avoids TB tiny MXU matmuls); assembled
    # lane-dense so the store is a single unmasked 128-lane vst.
    parts = []
    for k in range(K):
        wk = weights[:, :, k:k + 1]                                 # (TB, L, 1)
        parts.append(jnp.sum(wk * emb, axis=1))                     # (TB, D)
    out_ref[...] = jnp.concatenate(parts, axis=-1).astype(out_ref.dtype)   # (TB, K*D)


def _choose_batch_tile(B, L, D, K, itemsize=4,
                       vmem_budget_bytes=24 * 1024 * 1024,
                       min_split_batch=128):
    """Largest batch tile TB whose double-buffered VMEM footprint (plus an
    allowance for live f32 intermediates) fits the budget.  Big batches use
    >= 2 grid steps so the 'parallel' axis can shard across v7x's two
    TensorCores; multi-step tiles are multiples of 8 so the lane-dense output
    block satisfies the (8, 128) rule."""
    def pad_up(a, m):
        return -(-a // m) * m

    emb_b = pad_up(L, 8) * pad_up(D, 128) * itemsize        # embeddings rows / element
    mb_b = pad_up(L, 8) * 128 * itemsize                    # (bias, mask) columns / element
    out_b = pad_up(K * D, 128) * itemsize                   # lane-dense output row / element
    # double-buffered pipeline blocks + ~4 live f32 intermediates (proj/scores/e/weights)
    per_b = 2 * (emb_b + mb_b + out_b) + 4 * emb_b
    tb_max = max(8, vmem_budget_bytes // per_b)

    if B <= tb_max and B < min_split_batch:
        return B, 1                                         # one fat step, no ragged block
    n_steps = max(2, pl.cdiv(B, tb_max))
    tb = pad_up(pl.cdiv(B, n_steps), 8)
    return tb, pl.cdiv(B, tb)


def poly_attention(embeddings, attn_mask, linear_weight, context_codes, bias=None):
    """embeddings: (B, L, D); attn_mask: (B, L) bool; linear_weight: (P, D);
       context_codes: (K, P); bias: (B, L, C) or None.  Returns (B, K, D)."""
    B, L, D = embeddings.shape
    K, P = context_codes.shape
    assert linear_weight.shape == (P, D)
    assert attn_mask.shape == (B, L)

    # Cheap grid-invariant preprocessing hoisted out of the kernel.
    w_t = jnp.asarray(linear_weight).astype(jnp.float32).T          # (D, P)
    cc_t = jnp.asarray(context_codes).astype(jnp.float32).T         # (P, K)
    mask_f = attn_mask.astype(jnp.float32)                          # (B, L)
    if bias is None:
        bias_mean = jnp.zeros((B, L), jnp.float32)
    else:
        bias_mean = jnp.mean(bias.astype(jnp.float32), axis=2)      # (B, L)
    # One merged side input: col 0 = bias mean, col 1 = mask.
    mb = jnp.stack([bias_mean, mask_f], axis=-1).reshape(B * L, 2)

    TB, n_steps = _choose_batch_tile(B, L, D, K)

    out_flat = pl.pallas_call(
        _poly_attention_kernel,
        out_shape=jax.ShapeDtypeStruct((B, K * D), embeddings.dtype),
        grid_spec=pltpu.PrefetchScalarGridSpec(
            num_scalar_prefetch=0,
            grid=(n_steps,),
            in_specs=[
                pl.BlockSpec((TB, L, D), lambda b: (b, 0, 0)),      # embeddings
                pl.BlockSpec((TB * L, 2), lambda b: (b, 0)),        # (bias, mask) columns
                pl.BlockSpec((D, P), lambda b: (0, 0)),             # W^T (grid-invariant)
                pl.BlockSpec((P, K), lambda b: (0, 0)),             # context_codes^T
            ],
            out_specs=pl.BlockSpec((TB, K * D), lambda b: (b, 0)),  # lane-dense output
        ),
        compiler_params=pltpu.CompilerParams(
            dimension_semantics=("parallel",),
            vmem_limit_bytes=40 * 1024 * 1024),
    )(embeddings, mb, w_t, cc_t)

    return out_flat.reshape(B, K, D)


def _reference(embeddings, attn_mask, linear_weight, context_codes, bias=None):
    # pure-JAX mirror of the PyTorch forward, used for a sanity check
    hp = lax.Precision.HIGHEST
    proj = jnp.tanh(jnp.matmul(embeddings, linear_weight.T, precision=hp))   # (B, L, P)
    weights = jnp.matmul(proj, context_codes.T, precision=hp)                # (B, L, K)
    if bias is not None:
        weights = weights + jnp.mean(bias, axis=2, keepdims=True)
    weights = jnp.transpose(weights, (0, 2, 1))                              # (B, K, L)
    weights = jnp.where(attn_mask[:, None, :], weights, 1e-30)
    weights = jax.nn.softmax(weights, axis=2)
    return jnp.matmul(weights, embeddings, precision=hp)                     # (B, K, D)


if __name__ == "__main__":
    # Small shapes consistent with the module:
    # batch=2, his_length=8, embed_dim=32, context_code_dim=16,
    # num_context_codes=4, num_candidates=3
    B, L, D = 2, 8, 32
    P, K, C = 16, 4, 3

    key = jax.random.PRNGKey(0)
    k_emb, k_w, k_cc, k_bias, k_emb2, k_bias2 = jax.random.split(key, 6)

    embeddings = jax.random.normal(k_emb, (B, L, D), dtype=jnp.float32)

    # nn.Linear default init: U(-1/sqrt(fan_in), 1/sqrt(fan_in)), fan_in = D
    w_bound = 1.0 / jnp.sqrt(jnp.float32(D))
    linear_weight = jax.random.uniform(
        k_w, (P, D), dtype=jnp.float32, minval=-w_bound, maxval=w_bound)

    # xavier_uniform_ with tanh gain (5/3): U(-a, a), a = gain*sqrt(6/(K+P))
    gain = 5.0 / 3.0
    cc_bound = gain * jnp.sqrt(6.0 / (K + P))
    context_codes = jax.random.uniform(
        k_cc, (K, P), dtype=jnp.float32, minval=-cc_bound, maxval=cc_bound)

    bias = jax.random.normal(k_bias, (B, L, C), dtype=jnp.float32)

    # mask out the tail of the second batch element
    lengths = jnp.array([L, 5])
    attn_mask = jnp.arange(L)[None, :] < lengths[:, None]            # (B, L) bool

    out = jax.block_until_ready(
        poly_attention(embeddings, attn_mask, linear_weight, context_codes, bias))
    ref = _reference(embeddings, attn_mask, linear_weight, context_codes, bias)
    assert out.shape == (B, K, D)
    assert jnp.allclose(out, ref, rtol=1e-3, atol=1e-3)

    # bias=None branch
    out_nb = jax.block_until_ready(
        poly_attention(embeddings, attn_mask, linear_weight, context_codes, None))
    ref_nb = _reference(embeddings, attn_mask, linear_weight, context_codes, None)
    assert jnp.allclose(out_nb, ref_nb, rtol=1e-3, atol=1e-3)

    # larger batch: exercises the multi-step "parallel" grid (2 steps, TB=104)
    # and a ragged last block handled by Pallas partial-block semantics.
    B2 = 200
    emb2 = jax.random.normal(k_emb2, (B2, L, D), dtype=jnp.float32)
    bias2 = jax.random.normal(k_bias2, (B2, L, C), dtype=jnp.float32)
    lens2 = (jax.random.uniform(jax.random.PRNGKey(1), (B2,)) * (L - 1) + 1).astype(jnp.int32)
    mask2 = jnp.arange(L)[None, :] < lens2[:, None]
    out2 = jax.block_until_ready(
        poly_attention(emb2, mask2, linear_weight, context_codes, bias2))
    ref2 = _reference(emb2, mask2, linear_weight, context_codes, bias2)
    assert out2.shape == (B2, K, D)
    assert jnp.allclose(out2, ref2, rtol=1e-3, atol=1e-3)

    print("KERNEL_OK")
</pallas_src>

<mosaic_0001>
module attributes {stable_mosaic.version = 11 : i64} {
  func.func @_poly_attention_kernel(%arg0: i32, %arg1: memref<2x8x32xf32, #tpu.memory_space<vmem>>, %arg2: memref<16x2xf32, #tpu.memory_space<vmem>>, %arg3: memref<32x16xf32, #tpu.memory_space<vmem>>, %arg4: memref<16x4xf32, #tpu.memory_space<vmem>>, %arg5: memref<2x128xf32, #tpu.memory_space<vmem>>) attributes {dimension_semantics = [#tpu.dimension_semantics<parallel>], iteration_bounds = array<i64: 1>, scalar_prefetch = 0 : i64, scratch_operands = 0 : i64, tpu.core_type = #tpu.core_type<tc>, window_params = [{transform_indices = @transform_0, window_bounds = array<i64: 2, 8, 32>}, {transform_indices = @transform_1, window_bounds = array<i64: 16, 2>}, {pipeline_mode = #tpu.pipeline_mode<synchronous>, transform_indices = @transform_2, window_bounds = array<i64: 32, 16>}, {pipeline_mode = #tpu.pipeline_mode<synchronous>, transform_indices = @transform_3, window_bounds = array<i64: 16, 4>}, {transform_indices = @transform_4, window_bounds = array<i64: 2, 128>}]} {
    %c0 = arith.constant 0 : index
    %c0_0 = arith.constant 0 : index
    %c0_1 = arith.constant 0 : index
    %0 = vector.load %arg1[%c0, %c0_0, %c0_1] : memref<2x8x32xf32, #tpu.memory_space<vmem>>, vector<2x8x32xf32>
    %c0_2 = arith.constant 0 : index
    %c0_3 = arith.constant 0 : index
    %1 = vector.load %arg3[%c0_2, %c0_3] : memref<32x16xf32, #tpu.memory_space<vmem>>, vector<32x16xf32>
    %c0_4 = arith.constant 0 : index
    %c0_5 = arith.constant 0 : index
    %2 = vector.load %arg4[%c0_4, %c0_5] : memref<16x4xf32, #tpu.memory_space<vmem>>, vector<16x4xf32>
    %3 = vector.shape_cast %0 : vector<2x8x32xf32> to vector<16x32xf32>
    %cst = arith.constant dense<0.000000e+00> : vector<16x16xf32>
    %4 = tpu.matmul %3, %1, %cst {dimension_numbers = #tpu.dot_dimension_numbers<[1], [0], [0], [1], [0, 0, 1, 1], [], []>, precision = #tpu.contract_precision<fp32>} : vector<16x32xf32>, vector<32x16xf32>, vector<16x16xf32> -> vector<16x16xf32>
    %5 = math.tanh %4 : vector<16x16xf32>
    %cst_6 = arith.constant dense<0.000000e+00> : vector<16x4xf32>
    %6 = tpu.matmul %5, %2, %cst_6 {dimension_numbers = #tpu.dot_dimension_numbers<[1], [0], [0], [1], [0, 0, 1, 1], [], []>, precision = #tpu.contract_precision<fp32>} : vector<16x16xf32>, vector<16x4xf32>, vector<16x4xf32> -> vector<16x4xf32>
    %c0_7 = arith.constant 0 : index
    %c0_8 = arith.constant 0 : index
    %7 = vector.load %arg2[%c0_7, %c0_8] : memref<16x2xf32, #tpu.memory_space<vmem>>, vector<16x2xf32>
    %8 = vector.extract_strided_slice %7 {offsets = [0, 0], sizes = [16, 1], strides = [1, 1]} : vector<16x2xf32> to vector<16x1xf32>
    %9 = vector.broadcast %8 : vector<16x1xf32> to vector<16x4xf32>
    %10 = arith.addf %6, %9 : vector<16x4xf32>
    %11 = vector.extract_strided_slice %7 {offsets = [0, 1], sizes = [16, 1], strides = [1, 1]} : vector<16x2xf32> to vector<16x1xf32>
    %cst_9 = arith.constant 5.000000e-01 : f32
    %12 = vector.broadcast %cst_9 : f32 to vector<16x1xf32>
    %13 = arith.cmpf ogt, %11, %12 : vector<16x1xf32>
    %cst_10 = arith.constant 1.000000e-30 : f32
    %14 = vector.shape_cast %13 : vector<16x1xi1> to vector<16x1xi1>
    %15 = vector.broadcast %14 : vector<16x1xi1> to vector<16x4xi1>
    %16 = vector.broadcast %cst_10 : f32 to vector<16x4xf32>
    %17 = arith.select %15, %10, %16 : vector<16x4xi1>, vector<16x4xf32>
    %18 = vector.shape_cast %17 : vector<16x4xf32> to vector<2x8x4xf32>
    %cst_11 = arith.constant dense<0xFF800000> : vector<2x4xf32>
    %19 = vector.multi_reduction <maximumf>, %18, %cst_11 [1] : vector<2x8x4xf32> to vector<2x4xf32>
    %20 = vector.shape_cast %19 : vector<2x4xf32> to vector<2x1x4xf32>
    %21 = vector.broadcast %20 : vector<2x1x4xf32> to vector<2x8x4xf32>
    %22 = arith.subf %18, %21 : vector<2x8x4xf32>
    %23 = math.exp %22 : vector<2x8x4xf32>
    %cst_12 = arith.constant dense<0.000000e+00> : vector<2x4xf32>
    %24 = vector.multi_reduction <add>, %23, %cst_12 [1] : vector<2x8x4xf32> to vector<2x4xf32>
    %25 = vector.shape_cast %24 : vector<2x4xf32> to vector<2x1x4xf32>
    %26 = vector.broadcast %25 : vector<2x1x4xf32> to vector<2x8x4xf32>
    %27 = arith.divf %23, %26 : vector<2x8x4xf32>
    %28 = vector.extract_strided_slice %27 {offsets = [0, 0, 0], sizes = [2, 8, 1], strides = [1, 1, 1]} : vector<2x8x4xf32> to vector<2x8x1xf32>
    %29 = vector.broadcast %28 : vector<2x8x1xf32> to vector<2x8x32xf32>
    %30 = arith.mulf %29, %0 : vector<2x8x32xf32>
    %cst_13 = arith.constant dense<0.000000e+00> : vector<2x32xf32>
    %31 = vector.multi_reduction <add>, %30, %cst_13 [1] : vector<2x8x32xf32> to vector<2x32xf32>
    %32 = vector.extract_strided_slice %27 {offsets = [0, 0, 1], sizes = [2, 8, 1], strides = [1, 1, 1]} : vector<2x8x4xf32> to vector<2x8x1xf32>
    %33 = vector.broadcast %32 : vector<2x8x1xf32> to vector<2x8x32xf32>
    %34 = arith.mulf %33, %0 : vector<2x8x32xf32>
    %cst_14 = arith.constant dense<0.000000e+00> : vector<2x32xf32>
    %35 = vector.multi_reduction <add>, %34, %cst_14 [1] : vector<2x8x32xf32> to vector<2x32xf32>
    %36 = vector.extract_strided_slice %27 {offsets = [0, 0, 2], sizes = [2, 8, 1], strides = [1, 1, 1]} : vector<2x8x4xf32> to vector<2x8x1xf32>
    %37 = vector.broadcast %36 : vector<2x8x1xf32> to vector<2x8x32xf32>
    %38 = arith.mulf %37, %0 : vector<2x8x32xf32>
    %cst_15 = arith.constant dense<0.000000e+00> : vector<2x32xf32>
    %39 = vector.multi_reduction <add>, %38, %cst_15 [1] : vector<2x8x32xf32> to vector<2x32xf32>
    %40 = vector.extract_strided_slice %27 {offsets = [0, 0, 3], sizes = [2, 8, 1], strides = [1, 1, 1]} : vector<2x8x4xf32> to vector<2x8x1xf32>
    %41 = vector.broadcast %40 : vector<2x8x1xf32> to vector<2x8x32xf32>
    %42 = arith.mulf %41, %0 : vector<2x8x32xf32>
    %cst_16 = arith.constant dense<0.000000e+00> : vector<2x32xf32>
    %43 = vector.multi_reduction <add>, %42, %cst_16 [1] : vector<2x8x32xf32> to vector<2x32xf32>
    %44 = tpu.concatenate %31, %35, %39, %43 in 1 : vector<2x32xf32>, vector<2x32xf32>, vector<2x32xf32>, vector<2x32xf32> -> vector<2x128xf32>
    %c0_17 = arith.constant 0 : index
    %c0_18 = arith.constant 0 : index
    %45 = vector.load %arg5[%c0_17, %c0_18] : memref<2x128xf32, #tpu.memory_space<vmem>>, vector<2x128xf32>
    tpu.vector_store %arg5[%c0_17, %c0_18], %44 {strides = array<i32>} : memref<2x128xf32, #tpu.memory_space<vmem>>, vector<2x128xf32>,
    return
  }
  func.func @transform_0(%arg0: i32) -> (i32, i32, i32) {
    %c0_i32 = arith.constant 0 : i32
    %c0_i32_0 = arith.constant 0 : i32
    %c0_i32_1 = arith.constant 0 : i32
    return %arg0, %c0_i32, %c0_i32_0 : i32, i32, i32
  }
  func.func @transform_1(%arg0: i32) -> (i32, i32) {
    %c0_i32 = arith.constant 0 : i32
    %c0_i32_0 = arith.constant 0 : i32
    return %arg0, %c0_i32 : i32, i32
  }
  func.func @transform_2(%arg0: i32) -> (i32, i32) {
    %c0_i32 = arith.constant 0 : i32
    %c0_i32_0 = arith.constant 0 : i32
    %c0_i32_1 = arith.constant 0 : i32
    return %c0_i32, %c0_i32_0 : i32, i32
  }
  func.func @transform_3(%arg0: i32) -> (i32, i32) {
    %c0_i32 = arith.constant 0 : i32
    %c0_i32_0 = arith.constant 0 : i32
    %c0_i32_1 = arith.constant 0 : i32
    return %c0_i32, %c0_i32_0 : i32, i32
  }
  func.func @transform_4(%arg0: i32) -> (i32, i32) {
    %c0_i32 = arith.constant 0 : i32
    %c0_i32_0 = arith.constant 0 : i32
    return %arg0, %c0_i32 : i32, i32
  }
}

</mosaic_0001>

<bundles_post_ra>
// kernel: tpu_custom_call.1
= control target key start
LH: loop header
LB: loop body
LE: loop exit
PB: predicated region body
PF: predicated region fallthrough
CT: control target
= control target key end

     0   :  { %vm26_vm0 = vcmask 261120   ;;  %s1722_s0 = inlined_call_operand.vmem [shape: f32[2,8,32], index: 0, kind: input, shape index: {}]   ;;  %s1723_s1 = inlined_call_operand.vmem [shape: f32[16,2], index: 1, kind: input, shape index: {}]   ;;  %s1724_s2 = inlined_call_operand.vmem [shape: f32[32,16], index: 2, kind: input, shape index: {}]   ;;  %s1725_s3 = inlined_call_operand.vmem [shape: f32[16,4], index: 3, kind: input, shape index: {}]   ;;  %s1726_s4 = inlined_call_operand.hbm [shape: f32[2,128], index: 4, kind: output, shape index: {}]  }
   0x1   :  { %v20_v0 = vld [vmem:[%s1724_s2] sm:$0xff]  ;;  %v21_v1 = vld [vmem:[%s1724_s2 + $0x8] sm:$0xff]  ;;  %v22_v2 = vld [vmem:[%s1724_s2 + $0x10] sm:$0xff] }
   0x2   :  { %v34_v3 = vand.u32 4294901760, %v20_v0  ;;  %v37_v4 = vand.u32 4294901760, %v21_v1  ;;  %v23_v5 = vld [vmem:[%s1724_s2 + $0x18] sm:$0xff]  ;;  %v40_v6 = vand.u32 4294901760, %v22_v2  ;;  %v1641_v7 = vld [vmem:[%s1722_s0] sm:$0xff]  ;;  %v1646_v8 = vld [vmem:[%s1722_s0 + $0x8] sm:$0xff] }
   0x3   :  { %v43_v9 = vand.u32 4294901760, %v23_v5  ;;  %v28_v10 = vsel %vm26_vm0, %v1641_v7, 0  ;;  %v31_v11 = vsel %vm26_vm0, %v1646_v8, 0 }
   0x4   :  { %9 = vsyncpa [#allocation3], 0  ;;  %v1652_v12 = vpack.c.bf16 %v37_v4, %v34_v3  ;;  %v124_v13 = vsub.f32 %v20_v0, %v34_v3  ;;  %v131_v14 = vsub.f32 %v21_v1, %v37_v4  ;;  %v138_v15 = vsub.f32 %v22_v2, %v40_v6  ;;  %v24_v46 = vld [vmem:[%s1725_s3] sm:$0xff]  ;;  %v25_v47 = vld [vmem:[%s1725_s3 + $0x8] sm:$0xff]  ;;  %s1598_s6 = smov 64   ;;  %s1599_s7 = smov 96  }
   0x5   :  { %v145_v16 = vsub.f32 %v23_v5, %v43_v9  ;;  %v102_v17 = vand.u32 4294901760, %v28_v10  ;;  %v112_v18 = vand.u32 4294901760, %v31_v11  ;;  %v1450_v21 = vpack.c.bf16 %v43_v9, %v40_v6  ;;  %v563_v62 = vld [vmem:[%s1723_s1] sm:$0xff]  ;;  %v564_v63 = vld [vmem:[%s1723_s1 + $0x8] sm:$0xff]  ;;  %s1597_s1 = smov 32   ;;  %s1600_s8 = smov [#allocation2]  }
   0x6   :  { %v125_v19 = vand.u32 4294901760, %v124_v13  ;;  %v132_v20 = vand.u32 4294901760, %v131_v14  ;;  %v139_v22 = vand.u32 4294901760, %v138_v15  ;;  %1447 = vmatprep.subr.bf16.mxu1 %v1652_v12  ;;  %v1462_v42 = vpack.c.bf16 %v131_v14, %v124_v13  ;;  %s1270_s9 = sshll.u32 %s1600_s8, 4  ;;  %s1271_s9 = int_to_ptr.vmem [resolvable:$true] %s1270_s9 }
   0x7   :  { %v146_v23 = vand.u32 4294901760, %v145_v16  ;;  %1357 = vmatprep.mubr.f32.mxu0 %v102_v17  ;;  %v103_v24 = vsub.f32 %v28_v10, %v102_v17  ;;  %v113_v25 = vsub.f32 %v31_v11, %v112_v18  ;;  %1449 = vmatpush3.bf16.msra.mxu1 %v1652_v12  ;;  %v1466_v43 = vpack.c.bf16 %v145_v16, %v138_v15  ;;  %s1569_s10 = scalar_lea.vmem %s1271_s9, 32  ;;  %p1574_p1 = scmp.lt.s32.totalorder %s1271_s9, %s1271_s9 }
   0x8   :  { %v126_v26 = vsub.f32 %v124_v13, %v125_v19  ;;  %v133_v27 = vsub.f32 %v131_v14, %v132_v20  ;;  %v140_v28 = vsub.f32 %v138_v15, %v139_v22  ;;  %1451 = vmatprep.subr.bf16.mxu1 %v1450_v21  ;;  %v1478_v44 = vpack.c.bf16 %v132_v20, %v125_v19  ;;  %p1570_p0 = scmp.ne.s32.totalorder %s1271_s9, %s1569_s10  ;;  %p1575_p2 = scmp.lt.s32.totalorder %s1569_s10, %s1569_s10 }
   0x9   :  { %v147_v29 = vsub.f32 %v145_v16, %v146_v23  ;;  %v104_v30 = vand.u32 4294901760, %v103_v24  ;;  %v114_v31 = vand.u32 4294901760, %v113_v25  ;;  %v1482_v45 = vpack.c.bf16 %v146_v23, %v139_v22 }
   0xa   :  { %v127_v32 = vand.u32 4294901760, %v126_v26  ;;  %v134_v33 = vand.u32 4294901760, %v133_v27  ;;  %v141_v34 = vand.u32 4294901760, %v140_v28  ;;  %v583_v48 = vand.u32 4294901760, %v24_v46  ;;  %p1576_p3 = por %p1575_p2, %p1574_p1 }
   0xb   :  { %v148_v35 = vand.u32 4294901760, %v147_v29  ;;  %1453 = vmatpush3.bf16.msra.mxu1 %v1450_v21  ;;  %v105_v36 = vsub.f32 %v103_v24, %v104_v30  ;;  %v115_v37 = vsub.f32 %v113_v25, %v114_v31  ;;  %v586_v49 = vand.u32 4294901760, %v25_v47 }
   0xc   :  { %v1454_v38 = vpack.c.bf16 %v134_v33, %v127_v32  ;;  %v671_v51 = vsub.f32 %v24_v46, %v583_v48  ;;  %v1593_v0 = vmov 0   ;;  %v1594_v1 = vmov 1   ;;  %p1577_p4 = pnand %p1576_p3, %p1570_p0 }
   0xd   :  { %v1458_v39 = vpack.c.bf16 %v148_v35, %v141_v34  ;;  %v106_v40 = vand.u32 4294901760, %v105_v36  ;;  %v116_v41 = vand.u32 4294901760, %v115_v37  ;;  %v1666_v50 = vpack.c.bf16 %v586_v49, %v583_v48  ;;  %1548 = vset.pattern.permute.xlu0 %v1593_v0  ;;  %1549 = vset.pattern.permute.xlu1 %v1594_v1 }
   0xe   :  { %1455 = vmatprep.subr.bf16.mxu0 %v1454_v38  ;;  %v678_v52 = vsub.f32 %v25_v47, %v586_v49  ;;  %v672_v53 = vand.u32 4294901760, %v671_v51  ;;  %vm1084_vm1 = vcmp.gt.f32.partialorder %v563_v62, 0.5  ;;  %vm1085_vm2 = vcmp.gt.f32.partialorder %v564_v63, 0.5  ;;  %567 = vperm.xlu0 %1548, %v563_v62  }
   0xf   :  { %1457 = vmatpush3.bf16.msra.mxu0 %v1454_v38  ;;  %1346 = vmatprep.mubr.f32.mxu1 %v106_v40  ;;  %v1086_v2 = vsel %vm1084_vm1, 1, %v1593_v0  ;;  %v1087_v3 = vsel %vm1085_vm2, 1, %v1593_v0  ;;  %vm575_vm3 = vcmask 130048   ;;  %vm1098_vm4 = vcmask 31744  }
  0x10   :  { %1459 = vmatprep.subr.bf16.mxu0 %v1458_v39  ;;  %1347 = vmatmul.mubr.f32.vlgmr.msra.gmra.mrb[0].mxu1 %v116_v41  ;;  %v679_v54 = vand.u32 4294901760, %v678_v52  ;;  %v673_v55 = vsub.f32 %v671_v51, %v672_v53  ;;  %v1502_v60 = vpack.c.bf16 %v678_v52, %v671_v51  ;;  %vm1237_vm7 = vcmask 1041409  }
  0x11   :  { %1495 = vmatprep.subr.bf16.mxu1 %v1666_v50  ;;  %1089 = vperm.xlu1 %1549, %v1086_v2   ;;  %vm1259_vm8 = vcmask 523264   ;;  %vm1261_vm9 = vcmask 785408  }
  0x12   :  { %1497 = vmatpush3.bf16.msra.mxu1 %v1666_v50  ;;  %v680_v56 = vsub.f32 %v678_v52, %v679_v54  ;;  %v674_v57 = vand.u32 4294901760, %v673_v55  ;;  %v1510_v61 = vpack.c.bf16 %v679_v54, %v672_v53  ;;  %572 = vperm.xlu0 %1548, %v564_v63  }
  0x13   :  { %1461 = vmatpush3.bf16.msra.mxu0 %v1458_v39 }
  0x14   :  { %1463 = vmatprep.subr.bf16.mxu0 %v1462_v42  ;;  %v681_v58 = vand.u32 4294901760, %v680_v56 }
  0x15   :  { %1092 = vperm.xlu1 %1549, %v1087_v3  }
  0x16   :  { %1358 = vmatmul.mubr.f32.vlgmr.msra.gmra.mrb[0].mxu0 %v112_v18  ;;  %v1498_v59 = vpack.c.bf16 %v681_v58, %v674_v57  ;;  %1550 = vset.pattern.permute.xlu0 %v1594_v1 }
  0x17   :  { %1465 = vmatpush3.bf16.msra.mxu0 %v1462_v42  ;;  %1368 = vmatprep.mubr.f32.mxu0 %v103_v24 }
  0x18   :  { %1467 = vmatprep.subr.bf16.mxu0 %v1466_v43  ;;  %1499 = vmatprep.subr.bf16.mxu1 %v1498_v59 }
  0x1b   :  { %1469 = vmatpush3.bf16.msra.mxu0 %v1466_v43 }
  0x1c   :  { %1471 = vmatprep.subr.bf16.mxu0 %v1652_v12 }
  0x1e   :  { %1369 = vmatmul.mubr.f32.vlgmr.msra.gmra.mrb[0].mxu0 %v113_v25 }
  0x1f   :  { %1473 = vmatpush3.bf16.msra.mxu0 %v1652_v12  ;;  %1379 = vmatprep.mubr.f32.mxu0 %v104_v30 }
  0x20   :  { %1475 = vmatprep.subr.bf16.mxu0 %v1450_v21 }
  0x23   :  { %1477 = vmatpush3.bf16.msra.mxu0 %v1450_v21 }
  0x24   :  { %1479 = vmatprep.subr.bf16.mxu0 %v1478_v44 }
  0x26   :  { %1380 = vmatmul.mubr.f32.vlgmr.msra.gmra.mrb[0].mxu0 %v114_v31 }
  0x27   :  { %1481 = vmatpush3.bf16.msra.mxu0 %v1478_v44  ;;  %1390 = vmatprep.mubr.f32.mxu0 %v102_v17 }
  0x28   :  { %1483 = vmatprep.subr.bf16.mxu0 %v1482_v45 }
  0x2b   :  { %1485 = vmatpush3.bf16.msra.mxu0 %v1482_v45 }
  0x2c   :  { %1487 = vmatprep.subr.bf16.mxu0 %v1652_v12 }
  0x2e   :  { %1391 = vmatmul.mubr.f32.vlgmr.msra.gmra.mrb[0].mxu0 %v112_v18 }
  0x2f   :  { %1489 = vmatpush3.bf16.msra.mxu0 %v1652_v12  ;;  %1401 = vmatprep.mubr.f32.mxu0 %v102_v17 }
  0x30   :  { %1491 = vmatprep.subr.bf16.mxu0 %v1450_v21 }
  0x33   :  { %1493 = vmatpush3.bf16.msra.mxu0 %v1450_v21 }
  0x36   :  { %1402 = vmatmul.mubr.f32.vlgmr.msra.gmra.mrb[0].mxu0 %v112_v18 }
  0x8d   :  { %v568_v27 = vpop.permute.xlu0 %567 }
  0x90   :  { %v1090_v26 = vpop.permute.xlu1 %1089 }
  0x91   :  { %v573_v29 = vpop.permute.xlu0 %572  ;;  %vm1094_vm6 = vcmp.eq.s32.totalorder %v1090_v26, 1 }
  0x94   :  { %v1093_v28 = vpop.permute.xlu1 %1092 }
  0x95   :  { %vm1095_vm5 = vcmp.eq.s32.totalorder %v1093_v28, 1 }
  0xe3   :  { %v1348_v4 = vpop.f32.mrb[0].mxu1 }
  0xe4   :  { %v108_v5 = vpop.f32.mrb[1].mxu1 }
 0x109   :  { %v1403_v6 = vpop.f32.mrb[0].mxu0 }
 0x10a   :  { %v1518_v9 = vadd.f32 %v1403_v6, %v1348_v4  ;;  %v551_v10 = vpop.f32.mrb[1].mxu0 }
 0x10b   :  { %v1519_v11 = vadd.f32 %v551_v10, %v108_v5 }
 0x10c   :  { %1557 = vtanh.f32 %v1518_v9 }
 0x10d   :  { %1559 = vtanh.f32 %v1519_v11 }
 0x116   :  { %v1558_v12 = vpop.eup %1557 }
 0x117   :  { %v1560_v13 = vpop.eup %1559  ;;  %v580_v14 = vsel %vm575_vm3, %v1558_v12, 0 }
 0x118   :  { %v577_v15 = vsel %vm575_vm3, %v1560_v13, 0  ;;  %v659_v16 = vand.u32 4294901760, %v580_v14  ;;  %v1595_v13 = vmov 2  }
 0x119   :  { %v649_v17 = vand.u32 4294901760, %v577_v15 }
 0x11a   :  { %v660_v18 = vsub.f32 %v580_v14, %v659_v16  ;;  %v1596_v14 = vmov 3  }
 0x11b   :  { %v650_v19 = vsub.f32 %v577_v15, %v649_v17 }
 0x11c   :  { %v661_v20 = vand.u32 4294901760, %v660_v18 }
 0x11d   :  { %v651_v21 = vand.u32 4294901760, %v650_v19 }
 0x11e   :  { %v662_v22 = vsub.f32 %v660_v18, %v661_v20 }
 0x11f   :  { %v652_v23 = vsub.f32 %v650_v19, %v651_v21 }
 0x120   :  { %v663_v25 = vand.u32 4294901760, %v662_v22 }
 0x121   :  { %v653_v24 = vand.u32 4294901760, %v652_v23 }
 0x123   :  { %1408 = vmatprep.mubr.f32.mxu1 %v653_v24 }
 0x124   :  { %1409 = vmatmul.mubr.f32.vlgmr.msra.gmra.mrb[2].mxu1 %v663_v25 }
 0x125   :  { %1501 = vmatpush3.bf16.msra.mxu1 %v1498_v59  ;;  %1415 = vmatprep.mubr.f32.mxu1 %v649_v17 }
 0x126   :  { %1503 = vmatprep.subr.bf16.mxu1 %v1502_v60 }
 0x12c   :  { %1416 = vmatmul.mubr.f32.vlgmr.msra.gmra.mrb[2].mxu1 %v659_v16 }
 0x12d   :  { %1505 = vmatpush3.bf16.msra.mxu1 %v1502_v60  ;;  %1422 = vmatprep.mubr.f32.mxu1 %v650_v19 }
 0x12e   :  { %1507 = vmatprep.subr.bf16.mxu1 %v1666_v50 }
 0x134   :  { %1423 = vmatmul.mubr.f32.vlgmr.msra.gmra.mrb[2].mxu1 %v660_v18 }
 0x135   :  { %1509 = vmatpush3.bf16.msra.mxu1 %v1666_v50  ;;  %1429 = vmatprep.mubr.f32.mxu1 %v651_v21 }
 0x136   :  { %1511 = vmatprep.subr.bf16.mxu1 %v1510_v61 }
 0x13c   :  { %1430 = vmatmul.mubr.f32.vlgmr.msra.gmra.mrb[2].mxu1 %v661_v20 }
 0x13d   :  { %1513 = vmatpush3.bf16.msra.mxu1 %v1510_v61  ;;  %1436 = vmatprep.mubr.f32.mxu1 %v649_v17 }
 0x13e   :  { %1515 = vmatprep.subr.bf16.mxu1 %v1666_v50 }
 0x144   :  { %1437 = vmatmul.mubr.f32.vlgmr.msra.gmra.mrb[2].mxu1 %v659_v16 }
 0x145   :  { %1517 = vmatpush3.bf16.msra.mxu1 %v1666_v50  ;;  %1443 = vmatprep.mubr.f32.mxu1 %v649_v17 }
 0x14c   :  { %1444 = vmatmul.mubr.f32.vlgmr.msra.gmra.mrb[2].mxu1 %v659_v16 }
 0x21f   :  { %v1445_v30 = vpop.f32.mrb[2].mxu1 }
 0x220   :  { %v1520_v31 = vadd.f32 %v1445_v30, %v573_v29  ;;  %v1074_v32 = vpop.f32.mrb[3].mxu1 }
 0x221   :  { %v1521_v33 = vadd.f32 %v1074_v32, %v568_v27 }
 0x222   :  { %v1097_v34 = vsel %vm1095_vm5, %v1520_v31, 1e-30 }
 0x223   :  { %v1106_v35 = vsel %vm1098_vm4, %v1097_v34, -inf  ;;  %v1096_v36 = vsel %vm1094_vm6, %v1521_v33, 1e-30 }
 0x224   :  { %v1107_v37 = vrot.slane %v1106_v35, 4  ;;  %v1099_v38 = vsel %vm1098_vm4, %v1096_v36, -inf }
 0x225   :  { %v1100_v39 = vrot.slane %v1099_v38, 4 }
 0x226   :  { %v1108_v40 = vmax.f32 %v1106_v35, %v1107_v37 }
 0x227   :  { %v1101_v41 = vmax.f32 %v1099_v38, %v1100_v39 }
 0x228   :  { %v1109_v42 = vrot.slane %v1108_v40, 2 }
 0x229   :  { %v1102_v43 = vrot.slane %v1101_v41, 2 }
 0x22a   :  { %v1110_v44 = vmax.f32 %v1108_v40, %v1109_v42 }
 0x22b   :  { %v1103_v45 = vmax.f32 %v1101_v41, %v1102_v43 }
 0x22c   :  { %v1111_v46 = vrot.slane %v1110_v44, 1 }
 0x22d   :  { %v1104_v47 = vrot.slane %v1103_v45, 1 }
 0x22e   :  { %v1112_v48 = vmax.f32 %v1110_v44, %v1111_v46 }
 0x22f   :  { %v1105_v49 = vmax.f32 %v1103_v45, %v1104_v47 }
 0x230   :  { %v1114_v50 = vsub.f32 %v1097_v34, %v1112_v48 }
 0x231   :  { %v1113_v51 = vsub.f32 %v1096_v36, %v1105_v49 }
 0x232   :  { %v1117_v52 = vmul.f32 1.442695, %v1114_v50 }
 0x233   :  { %v1115_v53 = vmul.f32 1.442695, %v1113_v51 }
 0x234   :  { %1561 = vpow2.f32 %v1117_v52 }
 0x235   :  { %1563 = vpow2.f32 %v1115_v53 }
 0x23e   :  { %v1562_v54 = vpop.eup %1561 }
 0x23f   :  { %v1564_v55 = vpop.eup %1563  ;;  %v1126_v56 = vsel %vm1098_vm4, %v1562_v54, 0.0 }
 0x240   :  { %v1127_v57 = vrot.slane %v1126_v56, 4  ;;  %v1119_v58 = vsel %vm1098_vm4, %v1564_v55, 0.0 }
 0x241   :  { %v1120_v59 = vrot.slane %v1119_v58, 4 }
 0x242   :  { %v1128_v60 = vadd.f32 %v1127_v57, %v1126_v56 }
 0x243   :  { %v1121_v61 = vadd.f32 %v1120_v59, %v1119_v58 }
 0x244   :  { %v1129_v62 = vrot.slane %v1128_v60, 2 }
 0x245   :  { %v1122_v63 = vrot.slane %v1121_v61, 2 }
 0x246   :  { %v1130_v1 = vadd.f32 %v1129_v62, %v1128_v60 }
 0x247   :  { %v1123_v2 = vadd.f32 %v1122_v63, %v1121_v61 }
 0x248   :  { %v1131_v3 = vrot.slane %v1130_v1, 1 }
 0x249   :  { %v1124_v4 = vrot.slane %v1123_v2, 1 }
 0x24a   :  { %v1132_v5 = vadd.f32 %v1131_v3, %v1130_v1 }
 0x24b   :  { %v1125_v6 = vadd.f32 %v1124_v4, %v1123_v2 }
 0x24c   :  { %1565 = vrcp.f32 %v1132_v5 }
 0x24d   :  { %1567 = vrcp.f32 %v1125_v6 }
 0x256   :  { %v1566_v9 = vpop.eup %1565 }
 0x257   :  { %v1568_v10 = vpop.eup %1567  ;;  %v1136_v11 = vmul.f32 %v1566_v9, %v1562_v54 }
 0x258   :  { %v1134_v12 = vmul.f32 %v1568_v10, %v1564_v55 }
 0x259   :  { %1168 = vperm.xlu1 %1549, %v1136_v11  }
 0x25a   :  { %1164 = vperm.xlu0 %1550, %v1134_v12  }
 0x25d   :  { %1552 = vset.pattern.permute.xlu1 %v1595_v13 }
 0x25e   :  { %1188 = vperm.xlu1 %1552, %v1134_v12   ;;  %1551 = vset.pattern.permute.xlu0 %v1595_v13 }
 0x25f   :  { %1192 = vperm.xlu0 %1551, %v1136_v11  }
 0x262   :  { %1553 = vset.pattern.permute.xlu1 %v1596_v14 }
 0x263   :  { %1212 = vperm.xlu1 %1553, %v1134_v12   ;;  %1554 = vset.pattern.permute.xlu0 %v1593_v0 }
 0x264   :  { %1139 = vperm.xlu0 %1554, %v1134_v12  }
 0x267   :  { %1216 = vperm.xlu1 %1553, %v1136_v11  }
 0x268   :  { %1556 = vset.pattern.permute.xlu0 %v1596_v14 }
 0x26b   :  { %1555 = vset.pattern.permute.xlu1 %v1593_v0 }
 0x26c   :  { %1144 = vperm.xlu1 %1555, %v1136_v11  }
 0x2d8   :  { %v1169_v15 = vpop.permute.xlu1 %1168 }
 0x2d9   :  { %v1172_v16 = vmul.f32 %v1169_v15, %v1646_v8  ;;  %v1165_v17 = vpop.permute.xlu0 %1164 }
 0x2da   :  { %v1171_v18 = vmul.f32 %v1165_v17, %v1641_v7 }
 0x2db   :  { %v1180_v19 = vsel %vm26_vm0, %v1172_v16, 0.0 }
 0x2dc   :  { %v1181_v20 = vrot.slane %v1180_v19, 4  ;;  %v1173_v21 = vsel %vm26_vm0, %v1171_v18, 0.0 }
 0x2dd   :  { %v1174_v22 = vrot.slane %v1173_v21, 4  ;;  %v1189_v23 = vpop.permute.xlu1 %1188 }
 0x2de   :  { %v1182_v24 = vadd.f32 %v1181_v20, %v1180_v19  ;;  %v1195_v25 = vmul.f32 %v1189_v23, %v1641_v7  ;;  %v1193_v26 = vpop.permute.xlu0 %1192 }
 0x2df   :  { %v1175_v27 = vadd.f32 %v1174_v22, %v1173_v21  ;;  %v1196_v0 = vmul.f32 %v1193_v26, %v1646_v8 }
 0x2e0   :  { %v1183_v28 = vrot.slane %v1182_v24, 2  ;;  %v1197_v29 = vsel %vm26_vm0, %v1195_v25, 0.0 }
 0x2e1   :  { %v1176_v30 = vrot.slane %v1175_v27, 2  ;;  %v1198_v31 = vrot.slane %v1197_v29, 4  ;;  %v1204_v32 = vsel %vm26_vm0, %v1196_v0, 0.0 }
 0x2e2   :  { %v1184_v33 = vadd.f32 %v1183_v28, %v1182_v24  ;;  %v1205_v34 = vrot.slane %v1204_v32, 4  ;;  %v1213_v35 = vpop.permute.xlu1 %1212 }
 0x2e3   :  { %v1177_v36 = vadd.f32 %v1176_v30, %v1175_v27  ;;  %v1199_v37 = vadd.f32 %v1198_v31, %v1197_v29  ;;  %v1219_v38 = vmul.f32 %v1213_v35, %v1641_v7  ;;  %v1140_v11 = vpop.permute.xlu0 %1139 }
 0x2e4   :  { %v1185_v39 = vrot.slane %v1184_v33, 1  ;;  %v1206_v40 = vadd.f32 %v1205_v34, %v1204_v32  ;;  %v1147_v13 = vmul.f32 %v1140_v11, %v1641_v7 }
 0x2e5   :  { %v1178_v41 = vrot.slane %v1177_v36, 1  ;;  %v1200_v42 = vrot.slane %v1199_v37, 2  ;;  %v1221_v43 = vsel %vm26_vm0, %v1219_v38, 0.0 }
 0x2e6   :  { %v1207_v44 = vrot.slane %v1206_v40, 2  ;;  %v1222_v45 = vrot.slane %v1221_v43, 4  ;;  %v1217_v46 = vpop.permute.xlu1 %1216  ;;  %v1186_v47 = vadd.f32 %v1185_v39, %v1184_v33  ;;  %v1149_v15 = vsel %vm26_vm0, %v1147_v13, 0.0 }
 0x2e7   :  { %v1201_v48 = vadd.f32 %v1200_v42, %v1199_v37  ;;  %v1220_v49 = vmul.f32 %v1217_v46, %v1646_v8  ;;  %v1179_v50 = vadd.f32 %v1178_v41, %v1177_v36  ;;  %v1150_v17 = vrot.slane %v1149_v15, 4 }
 0x2e8   :  { %v1208_v51 = vadd.f32 %v1207_v44, %v1206_v40  ;;  %v1223_v52 = vadd.f32 %v1222_v45, %v1221_v43 }
 0x2e9   :  { %v1202_v53 = vrot.slane %v1201_v48, 1  ;;  %v1228_v54 = vsel %vm26_vm0, %v1220_v49, 0.0  ;;  %v1242_v55 = vsel %vm1237_vm7, %v1186_v47, %v1179_v50  ;;  %v1151_v19 = vadd.f32 %v1150_v17, %v1149_v15 }
 0x2ea   :  { %v1209_v56 = vrot.slane %v1208_v51, 1  ;;  %v1224_v57 = vrot.slane %v1223_v52, 2  ;;  %v1229_v58 = vrot.slane %v1228_v54, 4  ;;  %1243 = vrot.lane.b32.xlu1 %v1242_v55, %s1597_s1 }
 0x2eb   :  { %v1203_v59 = vadd.f32 %v1202_v53, %v1201_v48  ;;  %v1145_v10 = vpop.permute.xlu1 %1144  ;;  %v1152_v21 = vrot.slane %v1151_v19, 2 }
 0x2ec   :  { %v1225_v60 = vadd.f32 %v1224_v57, %v1223_v52  ;;  %v1230_v61 = vadd.f32 %v1229_v58, %v1228_v54  ;;  %v1210_v62 = vadd.f32 %v1209_v56, %v1208_v51  ;;  %v1148_v12 = vmul.f32 %v1145_v10, %v1646_v8 }
 0x2ed   :  { %v1153_v23 = vadd.f32 %v1152_v21, %v1151_v19 }
 0x2ee   :  { %v1231_v63 = vrot.slane %v1230_v61, 2  ;;  %v1248_v1 = vsel %vm1237_vm7, %v1210_v62, %v1203_v59  ;;  %v1226_v2 = vrot.slane %v1225_v60, 1  ;;  %v1156_v14 = vsel %vm26_vm0, %v1148_v12, 0.0 }
 0x2ef   :  { %1249 = vrot.lane.b32.xlu0 %v1248_v1, %s1598_s6  ;;  %v1157_v16 = vrot.slane %v1156_v14, 4  ;;  %v1154_v25 = vrot.slane %v1153_v23, 1 }
 0x2f0   :  { %v1232_v3 = vadd.f32 %v1231_v63, %v1230_v61  ;;  %v1227_v5 = vadd.f32 %v1226_v2, %v1225_v60 }
 0x2f1   :  { %v1158_v18 = vadd.f32 %v1157_v16, %v1156_v14  ;;  %v1155_v27 = vadd.f32 %v1154_v25, %v1153_v23 }
 0x2f2   :  { %v1233_v4 = vrot.slane %v1232_v3, 1 }
 0x2f3   :  { %v1159_v20 = vrot.slane %v1158_v18, 2 }
 0x2f4   :  { %v1234_v6 = vadd.f32 %v1233_v4, %v1232_v3 }
 0x2f5   :  { %v1160_v22 = vadd.f32 %v1159_v20, %v1158_v18 }
 0x2f6   :  { %v1254_v9 = vsel %vm1237_vm7, %v1234_v6, %v1227_v5 }
 0x2f7   :  { %1255 = vrot.lane.b32.xlu1 %v1254_v9, %s1599_s7  ;;  %v1161_v24 = vrot.slane %v1160_v22, 1 }
 0x2f9   :  { %v1162_v26 = vadd.f32 %v1161_v24, %v1160_v22 }
 0x2fb   :  { %v1238_v7 = vsel %vm1237_vm7, %v1162_v26, %v1155_v27 }
 0x35c   :  { %v1244_v0 = vpop.permute.xlu1 %1243 }
 0x35d   :  { %v1258_v28 = vsel %vm26_vm0, %v1238_v7, %v1244_v0 }
 0x361   :  { %v1250_v8 = vpop.permute.xlu0 %1249 }
 0x362   :  { %v1260_v29 = vsel %vm1259_vm8, %v1258_v28, %v1250_v8 }
 0x369   :  { %v1256_v30 = vpop.permute.xlu1 %1255 }
 0x36a   :  { %v1262_v31 = vsel %vm1261_vm9, %v1260_v29, %v1256_v30 }
 0x36b   :  { %1263 = vst [vmem:[#allocation2] sm:$0x3] %v1262_v31 }
 0x36c   :  { %1580 = shalt.err (!%p1577_p4)
}
 0x36d   :  { %s1581_s13 = scalar_lea.hbm %s1726_s4, 32 }
 0x36e   :  { %p1582_p5 = scmp.ne.s32.totalorder %s1726_s4, %s1581_s13  ;;  %p1585_p6 = scmp.lt.u32.totalorder %s1581_s13, %s1726_s4 }
 0x370   :  { %p1587_p7 = pnand %p1585_p6, %p1582_p5 }
 0x372   :  { %1590 = shalt.err (!%p1587_p7)
}
 0x373   :  { %1273 = dma.vmem_to_hbm [thread:$0]  %s1271_s9, 32, %s1726_s4, [#allocation3]  }
 0x374   :  { %1591 = dma.done.wait [#allocation3], 32  }
 0x375   :  { %1592 = vsyncadd [#allocation3], 4294967264 }
 0x376   :  { %1277 = vsyncpa [#allocation3], 1 }

</bundles_post_ra>
